<compile_context>
chip_gen: v6e
topology: v6e:2x2x1
jax: 0.10.0
libtpu: 0.0.40
codegen_flags: <defaults>
</compile_context>

<pallas_src>
import functools

import jax
import jax.numpy as jnp
from jax.experimental import pallas as pl
from jax.experimental.pallas import tpu as pltpu


def _jsd_kernel(p_ref, q_ref, out_ref, *, beta, epsilon):
    """One row-tile of logits -> per-row JSD partial sums (shape [rows, 1])."""
    p = p_ref[...].astype(jnp.float32)
    q = q_ref[...].astype(jnp.float32)

    # Numerically stable softmax over the last (lane) dim.
    p_max = jnp.max(p, axis=-1, keepdims=True)
    q_max = jnp.max(q, axis=-1, keepdims=True)
    ep = jnp.exp(p - p_max)
    eq = jnp.exp(q - q_max)
    # One reciprocal per row + broadcast multiply instead of V divides per row.
    # (approx=True would move this onto the EUP but costs ~1e-3 relative error.)
    inv_sp = pl.reciprocal(jnp.sum(ep, axis=-1, keepdims=True), approx=False)
    inv_sq = pl.reciprocal(jnp.sum(eq, axis=-1, keepdims=True), approx=False)
    P = ep * inv_sp
    Q = eq * inv_sq

    # Mixture distribution and its log.
    M = beta * P + (1.0 - beta) * Q
    Me = M + epsilon           # == exp(log(M+eps)); avoids one EUP exp per elem
    logM = jnp.log(Me)

    # Fused KL terms:
    #   beta*sum(Me*(logM-P)) + (1-beta)*sum(Me*(logM-Q)) = sum(Me*(logM-M))
    contrib = Me * (logM - M)

    # Per-row partial sums; the (cheap) cross-row sum and /B live in the wrapper.
    out_ref[...] = jnp.sum(contrib, axis=-1, keepdims=True)


def _largest_divisor_multiple_of_8(b, cap):
    """Largest r with r % 8 == 0, b % r == 0, r <= min(cap, b)."""
    cap = min(cap, b)
    best = 8
    r = 8
    while r <= cap:
        if b % r == 0:
            best = r
        r += 8
    return best


def jsd_loss(p, q, *, beta=0.5, epsilon=1e-12, block_rows=None,
             vmem_limit_bytes=None):
    """JSD loss between two logit tensors of shape [B, V] ('batchmean')."""
    assert p.shape == q.shape and p.ndim == 2
    B, V = p.shape
    assert B % 8 == 0, "batch must be a multiple of 8 (TPU sublane tiling)"

    # --- VMEM budget (per-generation): query if possible, else assume the
    # smallest physical VMEM across supported chips (v7x: 64 MiB per core).
    if vmem_limit_bytes is None:
        try:
            cap = pltpu.get_tpu_info().vmem_capacity_bytes
        except Exception:
            cap = 64 * 1024 * 1024
        vmem_limit_bytes = min(int(cap * 0.75), 100 * 1024 * 1024)

    # --- Pick the largest row tile that keeps the double-buffered input DMAs
    # plus in-kernel f32 temporaries comfortably inside the scoped VMEM limit.
    if block_rows is None:
        in_bytes = p.dtype.itemsize + q.dtype.itemsize
        per_row = V * (2 * in_bytes + 6 * 4)   # 2x-buffered inputs + ~6 f32 temps
        budget = int(0.6 * vmem_limit_bytes)
        cap_rows = max(8, budget // per_row)
        block_rows = _largest_divisor_multiple_of_8(B, cap_rows)
    assert block_rows % 8 == 0 and B % block_rows == 0
    # TODO(synk): for very large vocab (V >= 128k) tile the vocab axis with an
    # online-softmax (running max / running sum) formulation instead of
    # shrinking block_rows further.

    kernel = functools.partial(
        _jsd_kernel, beta=float(beta), epsilon=float(epsilon)
    )

    per_row_loss = pl.pallas_call(
        kernel,
        out_shape=jax.ShapeDtypeStruct((B, 1), jnp.float32),
        grid_spec=pltpu.PrefetchScalarGridSpec(
            num_scalar_prefetch=0,
            grid=(B // block_rows,),
            in_specs=[
                pl.BlockSpec((block_rows, V), lambda i: (i, 0)),
                pl.BlockSpec((block_rows, V), lambda i: (i, 0)),
            ],
            out_specs=pl.BlockSpec((block_rows, 1), lambda i: (i, 0)),
        ),
        compiler_params=pltpu.CompilerParams(
            # Each grid step is independent (writes its own output block), so
            # the axis can be sharded across v7x's two TensorCores.
            dimension_semantics=("parallel",),
            vmem_limit_bytes=vmem_limit_bytes,
        ),
    )(p, q)

    # 'batchmean' reduction: sum of all KL terms divided by the batch size.
    return jnp.sum(per_row_loss) / B


def _jsd_reference(p, q, beta=0.5, epsilon=1e-12):
    """Pure-JAX reference with the literal (unfused) module semantics."""
    P = jax.nn.softmax(p.astype(jnp.float32), axis=-1)
    Q = jax.nn.softmax(q.astype(jnp.float32), axis=-1)
    M = beta * P + (1.0 - beta) * Q
    logM = jnp.log(M + epsilon)
    expM = jnp.exp(logM)
    B = p.shape[0]
    kl_pm = jnp.sum(expM * (logM - P)) / B
    kl_qm = jnp.sum(expM * (logM - Q)) / B
    return beta * kl_pm + (1.0 - beta) * kl_qm


if __name__ == "__main__":
    key = jax.random.PRNGKey(0)
    kp, kq = jax.random.split(key)
    B, V = 16, 256  # small synthetic shapes: batch of 16 rows, vocab 256
    p = jax.random.normal(kp, (B, V), dtype=jnp.float32)
    q = jax.random.normal(kq, (B, V), dtype=jnp.float32)

    loss = jsd_loss(p, q, beta=0.5, epsilon=1e-12)
    jax.block_until_ready(loss)

    ref = _jsd_reference(p, q, beta=0.5, epsilon=1e-12)
    assert jnp.allclose(loss, ref, rtol=1e-4, atol=1e-5), (loss, ref)

    print("KERNEL_OK")
</pallas_src>

<mosaic_0001>
module attributes {stable_mosaic.version = 11 : i64} {
  func.func @_jsd_kernel(%arg0: i32, %arg1: memref<16x256xf32, #tpu.memory_space<vmem>>, %arg2: memref<16x256xf32, #tpu.memory_space<vmem>>, %arg3: memref<16x1xf32, #tpu.memory_space<vmem>>) attributes {dimension_semantics = [#tpu.dimension_semantics<parallel>], iteration_bounds = array<i64: 1>, scalar_prefetch = 0 : i64, scratch_operands = 0 : i64, tpu.core_type = #tpu.core_type<tc>, window_params = [{transform_indices = @transform_0, window_bounds = array<i64: 16, 256>}, {transform_indices = @transform_1, window_bounds = array<i64: 16, 256>}, {transform_indices = @transform_2, window_bounds = array<i64: 16, 1>}]} {
    %c0 = arith.constant 0 : index
    %c0_0 = arith.constant 0 : index
    %0 = vector.load %arg1[%c0, %c0_0] : memref<16x256xf32, #tpu.memory_space<vmem>>, vector<16x256xf32>
    %c0_1 = arith.constant 0 : index
    %c0_2 = arith.constant 0 : index
    %1 = vector.load %arg2[%c0_1, %c0_2] : memref<16x256xf32, #tpu.memory_space<vmem>>, vector<16x256xf32>
    %cst = arith.constant dense<0xFF800000> : vector<16xf32>
    %2 = vector.multi_reduction <maximumf>, %0, %cst [1] : vector<16x256xf32> to vector<16xf32>
    %3 = vector.shape_cast %2 : vector<16xf32> to vector<16x1xf32>
    %cst_3 = arith.constant dense<0xFF800000> : vector<16xf32>
    %4 = vector.multi_reduction <maximumf>, %1, %cst_3 [1] : vector<16x256xf32> to vector<16xf32>
    %5 = vector.shape_cast %4 : vector<16xf32> to vector<16x1xf32>
    %6 = vector.broadcast %3 : vector<16x1xf32> to vector<16x256xf32>
    %7 = arith.subf %0, %6 : vector<16x256xf32>
    %8 = math.exp %7 : vector<16x256xf32>
    %9 = vector.broadcast %5 : vector<16x1xf32> to vector<16x256xf32>
    %10 = arith.subf %1, %9 : vector<16x256xf32>
    %11 = math.exp %10 : vector<16x256xf32>
    %cst_4 = arith.constant dense<0.000000e+00> : vector<16xf32>
    %12 = vector.multi_reduction <add>, %8, %cst_4 [1] : vector<16x256xf32> to vector<16xf32>
    %13 = vector.shape_cast %12 : vector<16xf32> to vector<16x1xf32>
    %14 = tpu.reciprocal %13 : vector<16x1xf32> -> vector<16x1xf32>
    %cst_5 = arith.constant dense<0.000000e+00> : vector<16xf32>
    %15 = vector.multi_reduction <add>, %11, %cst_5 [1] : vector<16x256xf32> to vector<16xf32>
    %16 = vector.shape_cast %15 : vector<16xf32> to vector<16x1xf32>
    %17 = tpu.reciprocal %16 : vector<16x1xf32> -> vector<16x1xf32>
    %18 = vector.broadcast %14 : vector<16x1xf32> to vector<16x256xf32>
    %19 = arith.mulf %8, %18 : vector<16x256xf32>
    %20 = vector.broadcast %17 : vector<16x1xf32> to vector<16x256xf32>
    %21 = arith.mulf %11, %20 : vector<16x256xf32>
    %cst_6 = arith.constant 5.000000e-01 : f32
    %22 = vector.broadcast %cst_6 : f32 to vector<16x256xf32>
    %23 = arith.mulf %22, %19 : vector<16x256xf32>
    %cst_7 = arith.constant 5.000000e-01 : f32
    %24 = vector.broadcast %cst_7 : f32 to vector<16x256xf32>
    %25 = arith.mulf %24, %21 : vector<16x256xf32>
    %26 = arith.addf %23, %25 : vector<16x256xf32>
    %cst_8 = arith.constant 9.99999996E-13 : f32
    %27 = vector.broadcast %cst_8 : f32 to vector<16x256xf32>
    %28 = arith.addf %26, %27 : vector<16x256xf32>
    %29 = math.log %28 : vector<16x256xf32>
    %30 = arith.subf %29, %26 : vector<16x256xf32>
    %31 = arith.mulf %28, %30 : vector<16x256xf32>
    %cst_9 = arith.constant dense<0.000000e+00> : vector<16xf32>
    %32 = vector.multi_reduction <add>, %31, %cst_9 [1] : vector<16x256xf32> to vector<16xf32>
    %33 = vector.shape_cast %32 : vector<16xf32> to vector<16x1xf32>
    %c0_10 = arith.constant 0 : index
    %c0_11 = arith.constant 0 : index
    %34 = vector.load %arg3[%c0_10, %c0_11] : memref<16x1xf32, #tpu.memory_space<vmem>>, vector<16x1xf32>
    tpu.vector_store %arg3[%c0_10, %c0_11], %33 {strides = array<i32>} : memref<16x1xf32, #tpu.memory_space<vmem>>, vector<16x1xf32>,
    return
  }
  func.func @transform_0(%arg0: i32) -> (i32, i32) {
    %c0_i32 = arith.constant 0 : i32
    %c0_i32_0 = arith.constant 0 : i32
    return %arg0, %c0_i32 : i32, i32
  }
  func.func @transform_1(%arg0: i32) -> (i32, i32) {
    %c0_i32 = arith.constant 0 : i32
    %c0_i32_0 = arith.constant 0 : i32
    return %arg0, %c0_i32 : i32, i32
  }
  func.func @transform_2(%arg0: i32) -> (i32, i32) {
    %c0_i32 = arith.constant 0 : i32
    %c0_i32_0 = arith.constant 0 : i32
    return %arg0, %c0_i32 : i32, i32
  }
}

</mosaic_0001>

<bundles_post_ra>
// kernel: tpu_custom_call.1
= control target key start
LH: loop header
LB: loop body
LE: loop exit
PB: predicated region body
PF: predicated region fallthrough
CT: control target
= control target key end

     0   :  { %7 = vsyncpa [#allocation3], 0  ;;  %s265_s0 = inlined_call_operand.hbm [shape: f32[16,256], index: 0, kind: input, shape index: {}]   ;;  %s266_s1 = inlined_call_operand.hbm [shape: f32[16,256], index: 1, kind: input, shape index: {}]   ;;  %s267_s2 = inlined_call_operand.vmem [shape: f32[16,1], index: 2, kind: output, shape index: {}]  }
   0x1   :  { %8 = vsyncpa [#allocation5], 0  ;;  %s234_s9 = smov [#allocation2]  }
   0x2   :  { %s14_s10 = sshll.u32 %s234_s9, 4  ;;  %s15_s10 = int_to_ptr.vmem [resolvable:$true] %s14_s10 }
   0x3   :  { %s198_s11 = scalar_lea.vmem %s15_s10, 512  ;;  %p203_p1 = scmp.lt.s32.totalorder %s15_s10, %s15_s10 }
   0x4   :  { %p199_p0 = scmp.ne.s32.totalorder %s15_s10, %s198_s11  ;;  %p204_p2 = scmp.lt.s32.totalorder %s198_s11, %s198_s11 }
   0x6   :  { %p205_p3 = por %p204_p2, %p203_p1 }
   0x8   :  { %p206_p4 = pnand %p205_p3, %p199_p0 }
   0xa   :  { %209 = shalt.err (!%p206_p4)
}
   0xb   :  { %s235_s12 = smov 256   ;;  %s236_s13 = smov 16  }
   0xc   :  { %20 = dma.hbm_to_vmem [thread:$0]  %s265_s0, 512, %s15_s10, [#allocation3], %s235_s12, %s235_s12, %s236_s13  }
   0xd   :  { %s237_s16 = smov [#allocation4]  }
   0xe   :  { %s26_s17 = sshll.u32 %s237_s16, 4  ;;  %s27_s17 = int_to_ptr.vmem [resolvable:$true] %s26_s17 }
   0xf   :  { %s218_s18 = scalar_lea.vmem %s27_s17, 512  ;;  %p223_p6 = scmp.lt.s32.totalorder %s27_s17, %s27_s17 }
  0x10   :  { %p219_p5 = scmp.ne.s32.totalorder %s27_s17, %s218_s18  ;;  %p224_p7 = scmp.lt.s32.totalorder %s218_s18, %s218_s18 }
  0x12   :  { %p225_p8 = por %p224_p7, %p223_p6 }
  0x14   :  { %p226_p9 = pnand %p225_p8, %p219_p5 }
  0x16   :  { %229 = shalt.err (!%p226_p9)
}
  0x17   :  { %32 = dma.hbm_to_vmem [thread:$0]  %s266_s1, 512, %s27_s17, [#allocation5], %s235_s12, %s235_s12, %s236_s13  }
  0x18   :  { %230 = dma.done.wait [#allocation3], 512  }
  0x19   :  { %231 = vsyncadd [#allocation3], 4294966784 }
  0x1a   :  { %232 = dma.done.wait [#allocation5], 512  }
  0x1b   :  { %233 = vsyncadd [#allocation5], 4294966784  ;;  %v39_v0 = vld [vmem:[#allocation2] sm:$0xff]  ;;  %v40_v1 = vld [vmem:[#allocation2 + $0x8] sm:$0xff]  ;;  %vm145_vm0 = vcmask 7168  }
  0x1c   :  { %v43_v2 = vld [vmem:[#allocation4] sm:$0xff]  ;;  %v47_v3 = vmax.f32 %v39_v0, %v40_v1  ;;  %v44_v4 = vld [vmem:[#allocation4 + $0x8] sm:$0xff]  ;;  %v41_v5 = vld [vmem:[#allocation2 + $0x10] sm:$0xff] }
  0x1d   :  { %v42_v6 = vld [vmem:[#allocation2 + $0x18] sm:$0xff]  ;;  %v53_v7 = vmax.f32 %v43_v2, %v44_v4  ;;  %v45_v8 = vld [vmem:[#allocation4 + $0x10] sm:$0xff] }
  0x1e   :  { %v46_v9 = vld [vmem:[#allocation4 + $0x18] sm:$0xff]  ;;  %48 = vmax.xlane.f32.xlu0 %v47_v3  ;;  %v50_v10 = vmax.f32 %v41_v5, %v42_v6 }
  0x1f   :  { %54 = vmax.xlane.f32.xlu1 %v53_v7  ;;  %v56_v11 = vmax.f32 %v45_v8, %v46_v9 }
  0x22   :  { %51 = vmax.xlane.f32.xlu0 %v50_v10 }
  0x23   :  { %57 = vmax.xlane.f32.xlu1 %v56_v11 }
  0xa7   :  { %v49_v12 = vpop.xlane.xlu0 %48 }
  0xa8   :  { %v59_v13 = vsub.f32 %v39_v0, %v49_v12  ;;  %v60_v14 = vsub.f32 %v40_v1, %v49_v12  ;;  %v55_v15 = vpop.xlane.xlu1 %54 }
  0xa9   :  { %v71_v16 = vsub.f32 %v43_v2, %v55_v15  ;;  %v72_v17 = vsub.f32 %v44_v4, %v55_v15 }
  0xaa   :  { %v63_v18 = vmul.f32 1.442695, %v59_v13  ;;  %v65_v19 = vmul.f32 1.442695, %v60_v14 }
  0xab   :  { %v75_v20 = vmul.f32 1.442695, %v71_v16  ;;  %v77_v21 = vmul.f32 1.442695, %v72_v17  ;;  %v52_v22 = vpop.xlane.xlu0 %51 }
  0xac   :  { %158 = vpow2.f32 %v63_v18  ;;  %v61_v23 = vsub.f32 %v41_v5, %v52_v22  ;;  %v62_v24 = vsub.f32 %v42_v6, %v52_v22  ;;  %v58_v25 = vpop.xlane.xlu1 %57 }
  0xad   :  { %160 = vpow2.f32 %v65_v19  ;;  %v73_v26 = vsub.f32 %v45_v8, %v58_v25  ;;  %v74_v27 = vsub.f32 %v46_v9, %v58_v25 }
  0xae   :  { %162 = vpow2.f32 %v75_v20  ;;  %v67_v28 = vmul.f32 1.442695, %v61_v23  ;;  %v69_v29 = vmul.f32 1.442695, %v62_v24 }
  0xaf   :  { %164 = vpow2.f32 %v77_v21  ;;  %v79_v30 = vmul.f32 1.442695, %v73_v26  ;;  %v81_v31 = vmul.f32 1.442695, %v74_v27 }
  0xb0   :  { %166 = vpow2.f32 %v67_v28 }
  0xb1   :  { %168 = vpow2.f32 %v69_v29 }
  0xb2   :  { %170 = vpow2.f32 %v79_v30 }
  0xb3   :  { %172 = vpow2.f32 %v81_v31 }
  0xb9   :  { %v159_v32 = vpop.eup %158 }
  0xba   :  { %v161_v33 = vpop.eup %160 }
  0xbb   :  { %v163_v34 = vpop.eup %162  ;;  %v83_v35 = vadd.f32 %v161_v33, %v159_v32 }
  0xbc   :  { %v165_v36 = vpop.eup %164 }
  0xbd   :  { %v167_v37 = vpop.eup %166  ;;  %84 = vadd.xlane.f32.xlu0 %v83_v35  ;;  %v91_v38 = vadd.f32 %v165_v36, %v163_v34 }
  0xbe   :  { %v169_v39 = vpop.eup %168 }
  0xbf   :  { %v171_v40 = vpop.eup %170  ;;  %v86_v41 = vadd.f32 %v169_v39, %v167_v37 }
  0xc0   :  { %v173_v42 = vpop.eup %172 }
  0xc1   :  { %92 = vadd.xlane.f32.xlu0 %v91_v38  ;;  %87 = vadd.xlane.f32.xlu1 %v86_v41  ;;  %v94_v43 = vadd.f32 %v173_v42, %v171_v40 }
  0xc5   :  { %95 = vadd.xlane.f32.xlu1 %v94_v43 }
 0x146   :  { %v85_v44 = vpop.xlane.xlu0 %84 }
 0x147   :  { %174 = vrcp.f32 %v85_v44 }
 0x14a   :  { %v88_v45 = vpop.xlane.xlu1 %87  ;;  %v93_v46 = vpop.xlane.xlu0 %92 }
 0x14b   :  { %176 = vrcp.f32 %v88_v45 }
 0x14c   :  { %178 = vrcp.f32 %v93_v46 }
 0x14e   :  { %v96_v47 = vpop.xlane.xlu1 %95 }
 0x14f   :  { %180 = vrcp.f32 %v96_v47 }
 0x154   :  { %v175_v48 = vpop.eup %174 }
 0x155   :  { %v99_v50 = vmul.f32 %v175_v48, %v159_v32  ;;  %v100_v51 = vmul.f32 %v175_v48, %v161_v33 }
 0x157   :  { %v107_v58 = vmul.f32 0.5, %v99_v50  ;;  %v108_v59 = vmul.f32 0.5, %v100_v51 }
 0x158   :  { %v177_v49 = vpop.eup %176 }
 0x159   :  { %v179_v52 = vpop.eup %178  ;;  %v101_v55 = vmul.f32 %v177_v49, %v167_v37  ;;  %v102_v56 = vmul.f32 %v177_v49, %v169_v39 }
 0x15a   :  { %v103_v53 = vmul.f32 %v179_v52, %v163_v34  ;;  %v104_v54 = vmul.f32 %v179_v52, %v165_v36 }
 0x15b   :  { %v109_v2 = vmul.f32 0.5, %v101_v55  ;;  %v110_v3 = vmul.f32 0.5, %v102_v56 }
 0x15c   :  { %v181_v57 = vpop.eup %180  ;;  %v111_v60 = vmul.f32 0.5, %v103_v53  ;;  %v112_v61 = vmul.f32 0.5, %v104_v54 }
 0x15d   :  { %v105_v62 = vmul.f32 %v181_v57, %v171_v40  ;;  %v106_v63 = vmul.f32 %v181_v57, %v173_v42 }
 0x15e   :  { %v115_v0 = vadd.f32 %v111_v60, %v107_v58  ;;  %v116_v1 = vadd.f32 %v112_v61, %v108_v59 }
 0x15f   :  { %v113_v4 = vmul.f32 0.5, %v105_v62  ;;  %v114_v5 = vmul.f32 0.5, %v106_v63 }
 0x160   :  { %v119_v6 = vadd.f32 1e-12, %v115_v0  ;;  %v120_v7 = vadd.f32 1e-12, %v116_v1 }
 0x161   :  { %v117_v8 = vadd.f32 %v113_v4, %v109_v2  ;;  %v118_v9 = vadd.f32 %v114_v5, %v110_v3 }
 0x162   :  { %182 = vlog2.f32 %v119_v6 }
 0x163   :  { %184 = vlog2.f32 %v120_v7  ;;  %v121_v10 = vadd.f32 1e-12, %v117_v8  ;;  %v122_v11 = vadd.f32 1e-12, %v118_v9 }
 0x165   :  { %186 = vlog2.f32 %v121_v10 }
 0x166   :  { %188 = vlog2.f32 %v122_v11 }
 0x16f   :  { %v183_v12 = vpop.eup %182 }
 0x170   :  { %v185_v13 = vpop.eup %184  ;;  %v124_v14 = vmul.f32 0.6931472, %v183_v12 }
 0x171   :  { %v126_v15 = vmul.f32 0.6931472, %v185_v13 }
 0x172   :  { %v187_v16 = vpop.eup %186  ;;  %v131_v17 = vsub.f32 %v124_v14, %v115_v0 }
 0x173   :  { %v189_v18 = vpop.eup %188  ;;  %v132_v19 = vsub.f32 %v126_v15, %v116_v1  ;;  %v128_v20 = vmul.f32 0.6931472, %v187_v16 }
 0x174   :  { %v135_v21 = vmul.f32 %v131_v17, %v119_v6  ;;  %v130_v22 = vmul.f32 0.6931472, %v189_v18 }
 0x175   :  { %v136_v23 = vmul.f32 %v132_v19, %v120_v7  ;;  %v133_v24 = vsub.f32 %v128_v20, %v117_v8 }
 0x176   :  { %v134_v25 = vsub.f32 %v130_v22, %v118_v9 }
 0x177   :  { %v139_v26 = vadd.f32 %v136_v23, %v135_v21  ;;  %v137_v27 = vmul.f32 %v133_v24, %v121_v10 }
 0x178   :  { %v138_v28 = vmul.f32 %v134_v25, %v122_v11 }
 0x179   :  { %140 = vadd.xlane.f32.xlu0 %v139_v26 }
 0x17a   :  { %v142_v29 = vadd.f32 %v138_v28, %v137_v27 }
 0x17c   :  { %143 = vadd.xlane.f32.xlu1 %v142_v29 }
 0x202   :  { %v141_v30 = vpop.xlane.xlu0 %140 }
 0x203   :  { %146 = vst.msk [vmem:[%s267_s2] sm:$0xff] %vm145_vm0, %v141_v30 }
 0x205   :  { %v144_v31 = vpop.xlane.xlu1 %143 }
 0x206   :  { %147 = vst.msk [vmem:[%s267_s2 + $0x8] sm:$0xff] %vm145_vm0, %v144_v31 }
 0x207   :  { %152 = vsyncpa [#allocation3], 1 }
 0x208   :  { %153 = vsyncpa [#allocation5], 1 }

</bundles_post_ra>
